<compile_context>
chip_gen: v5e
topology: v5e:2x2
jax: 0.10.0
libtpu: 0.0.40
codegen_flags: <defaults>
</compile_context>

<pallas_src>
import math
import functools

import jax
import jax.numpy as jnp
from jax import lax
from jax.experimental import pallas as pl
from jax.experimental.pallas import tpu as pltpu


# ----------------------------------------------------------------------------
# Kernel 1: fused QKV projection.
# ----------------------------------------------------------------------------
def _qkv_proj_kernel(x_ref, wqkv_ref, bqkv_ref, q_ref, k_ref, v_ref,
                     *, hidden, scale):
    """One grid step == one (batch, seq-tile).  x tile is (ts, H)."""
    x = x_ref[0].astype(jnp.bfloat16)                       # (ts, H) bf16
    # One wide MXU matmul (N = 3H) with f32 accumulation.
    qkv = jnp.dot(x, wqkv_ref[...], preferred_element_type=jnp.float32)
    qkv = qkv + bqkv_ref[...]                               # f32 bias
    # Fold 1/sqrt(head_dim) into Q once here (cheaper than per-score scaling).
    q_ref[0] = (qkv[:, :hidden] * scale).astype(q_ref.dtype)
    k_ref[0] = qkv[:, hidden:2 * hidden].astype(k_ref.dtype)
    v_ref[0] = qkv[:, 2 * hidden:].astype(v_ref.dtype)


# ----------------------------------------------------------------------------
# Kernel 2: flash-style attention with online softmax.
# ----------------------------------------------------------------------------
def _flash_attn_kernel(q_ref, k_ref, v_ref, mask_ref, out_ref,
                       m_ref, l_ref, acc_ref, *, heads_per_group, head_dim):
    ki = pl.program_id(3)

    @pl.when(ki == 0)
    def _init():
        m_ref[...] = jnp.full_like(m_ref, -1e30)
        l_ref[...] = jnp.zeros_like(l_ref)
        acc_ref[...] = jnp.zeros_like(acc_ref)

    mask_row = mask_ref[0]                                   # (1, tk) additive
    q_blk = q_ref[0]                                         # (tq, gw) bf16
    k_blk = k_ref[0]                                         # (tk, gw) bf16
    v_blk = v_ref[0]                                         # (tk, gw) bf16

    # Small static loop: only the heads in this group (1-4), everything else
    # goes through VMEM scratch so live ranges stay bounded.
    for h in range(heads_per_group):
        lo = h * head_dim
        hi = lo + head_dim
        qh = q_blk[:, lo:hi]                                 # (tq, d) pre-scaled
        kh = k_blk[:, lo:hi]                                 # (tk, d)
        vh = v_blk[:, lo:hi]                                 # (tk, d)

        # Contract on the last dim -> no in-kernel K transpose.
        s = lax.dot_general(qh, kh,
                            dimension_numbers=(((1,), (1,)), ((), ())),
                            preferred_element_type=jnp.float32)   # (tq, tk)
        s = s + mask_row

        m_prev = m_ref[h]                                    # (tq, 1)
        m_new = jnp.maximum(m_prev, jnp.max(s, axis=-1, keepdims=True))
        alpha = jnp.exp(m_prev - m_new)                      # (tq, 1)
        p = jnp.exp(s - m_new)                               # (tq, tk) f32

        l_ref[h] = alpha * l_ref[h] + jnp.sum(p, axis=-1, keepdims=True)
        acc_ref[:, lo:hi] = alpha * acc_ref[:, lo:hi] + jnp.dot(
            p.astype(v_blk.dtype), vh, preferred_element_type=jnp.float32)
        m_ref[h] = m_new
        # TODO(synk): attention-probs dropout omitted (eval mode => identity).

    @pl.when(ki == pl.num_programs(3) - 1)
    def _finalize():
        parts = []
        for h in range(heads_per_group):
            lo = h * head_dim
            hi = lo + head_dim
            inv = pl.reciprocal(l_ref[h], approx=True)       # EUP reciprocal
            parts.append(acc_ref[:, lo:hi] * inv)
        # Single lane-dense store of the whole head-group slab.
        out_ref[0] = jnp.concatenate(parts, axis=-1).astype(out_ref.dtype)


# ----------------------------------------------------------------------------
# Helpers.
# ----------------------------------------------------------------------------
def _pick_tile(n, target):
    """Largest tile <= target that evenly divides n (multiple of 8 if tiled)."""
    if n <= target:
        return n
    for t in range(target, 0, -1):
        if n % t == 0 and t % 8 == 0:
            return t
    return n


def _pick_head_group(num_heads, head_dim):
    """Heads processed per grid step; group lane width must be a multiple of
    128 (aligned lane slices) or cover the whole hidden dim."""
    if head_dim % 128 == 0:
        return 1
    if 128 % head_dim == 0:
        g = 128 // head_dim
        if num_heads % g == 0:
            return g
    return num_heads


# ----------------------------------------------------------------------------
# Wrapper.
# ----------------------------------------------------------------------------
def bert_generation_self_attention(hidden_states, params, attention_mask=None,
                                   *, num_heads):
    """hidden_states: [B, S, H] float32.  attention_mask: additive HF padding
    mask of shape [B, 1, 1, S] (or [B, S]) or None.  Returns [B, S, H]."""
    B, S, H = hidden_states.shape
    assert H % num_heads == 0
    head_dim = H // num_heads
    scale = 1.0 / math.sqrt(head_dim)

    # Fused QKV parameters: one [H, 3H] bf16 weight, one [1, 3H] f32 bias.
    wqkv = jnp.concatenate([params["wq"], params["wk"], params["wv"]],
                           axis=1).astype(jnp.bfloat16)
    bqkv = jnp.concatenate([params["bq"].reshape(-1),
                            params["bk"].reshape(-1),
                            params["bv"].reshape(-1)]).reshape(1, 3 * H)
    bqkv = bqkv.astype(jnp.float32)

    # Compact additive key mask [B, 1, S] (no [B,1,S,S] materialization).
    # TODO(synk): full per-query [B,1,S,S] masks not supported in this path.
    if attention_mask is None:
        key_mask = jnp.zeros((B, 1, S), dtype=jnp.float32)
    else:
        key_mask = attention_mask.reshape(B, 1, S).astype(jnp.float32)

    # ---------------- Kernel 1: fused QKV projection ----------------
    ts = _pick_tile(S, 512)
    q, k, v = pl.pallas_call(
        functools.partial(_qkv_proj_kernel, hidden=H, scale=scale),
        out_shape=(jax.ShapeDtypeStruct((B, S, H), jnp.bfloat16),) * 3,
        grid_spec=pltpu.PrefetchScalarGridSpec(
            num_scalar_prefetch=0,
            grid=(B, S // ts),
            in_specs=[
                pl.BlockSpec((1, ts, H), lambda b, si: (b, si, 0)),   # x
                pl.BlockSpec((H, 3 * H), lambda b, si: (0, 0)),       # Wqkv
                pl.BlockSpec((1, 3 * H), lambda b, si: (0, 0)),       # bqkv
            ],
            out_specs=[pl.BlockSpec((1, ts, H), lambda b, si: (b, si, 0))] * 3,
        ),
        compiler_params=pltpu.CompilerParams(
            dimension_semantics=("parallel", "parallel"),
            vmem_limit_bytes=64 * 1024 * 1024),
    )(hidden_states, wqkv, bqkv)

    # ---------------- Kernel 2: flash attention ----------------
    g = _pick_head_group(num_heads, head_dim)      # heads per grid step
    gw = g * head_dim                              # lane width of a head group
    num_groups = num_heads // g
    tq = _pick_tile(S, 512)
    tk = _pick_tile(S, 512)

    kernel = functools.partial(_flash_attn_kernel,
                               heads_per_group=g, head_dim=head_dim)

    return pl.pallas_call(
        kernel,
        out_shape=jax.ShapeDtypeStruct((B, S, H), hidden_states.dtype),
        grid_spec=pltpu.PrefetchScalarGridSpec(
            num_scalar_prefetch=0,
            grid=(B, num_groups, S // tq, S // tk),
            in_specs=[
                pl.BlockSpec((1, tq, gw), lambda b, hg, qi, ki: (b, qi, hg)),  # q
                pl.BlockSpec((1, tk, gw), lambda b, hg, qi, ki: (b, ki, hg)),  # k
                pl.BlockSpec((1, tk, gw), lambda b, hg, qi, ki: (b, ki, hg)),  # v
                pl.BlockSpec((1, 1, tk), lambda b, hg, qi, ki: (b, 0, ki)),    # mask
            ],
            out_specs=pl.BlockSpec((1, tq, gw), lambda b, hg, qi, ki: (b, qi, hg)),
            scratch_shapes=[
                pltpu.VMEM((g, tq, 1), jnp.float32),   # running max m
                pltpu.VMEM((g, tq, 1), jnp.float32),   # running sum l
                pltpu.VMEM((tq, gw), jnp.float32),     # context accumulator
            ],
        ),
        compiler_params=pltpu.CompilerParams(
            dimension_semantics=("parallel", "parallel", "parallel", "arbitrary"),
            vmem_limit_bytes=64 * 1024 * 1024),
    )(q, k, v, key_mask)


# ----------------------------------------------------------------------------
# Pure-JAX reference (absolute position-embedding, self-attention path).
# ----------------------------------------------------------------------------
def _reference(hidden_states, params, attention_mask, num_heads):
    B, S, H = hidden_states.shape
    d = H // num_heads

    def proj(x, w, b):
        return x @ w + b

    def to_scores(x):  # (B,S,H) -> (B,nh,S,d)
        return x.reshape(B, S, num_heads, d).transpose(0, 2, 1, 3)

    q = to_scores(proj(hidden_states, params["wq"], params["bq"]))
    k = to_scores(proj(hidden_states, params["wk"], params["bk"]))
    v = to_scores(proj(hidden_states, params["wv"], params["bv"]))

    scores = jnp.einsum("bhld,bhrd->bhlr", q, k) / math.sqrt(d)
    if attention_mask is not None:
        scores = scores + attention_mask            # broadcast over heads/rows
    probs = jax.nn.softmax(scores, axis=-1)
    ctx = jnp.einsum("bhlr,bhrd->bhld", probs, v)
    return ctx.transpose(0, 2, 1, 3).reshape(B, S, H)


if __name__ == "__main__":
    # Small config consistent with the module: hidden_size % num_heads == 0.
    B, S, H, NUM_HEADS = 2, 8, 32, 4

    key = jax.random.PRNGKey(0)
    k_x, k_wq, k_wk, k_wv, k_bq, k_bk, k_bv, k_m = jax.random.split(key, 8)

    hidden_states = jax.random.normal(k_x, (B, S, H), dtype=jnp.float32)

    init = lambda kk, shape: (jax.random.normal(kk, shape, dtype=jnp.float32)
                              * (1.0 / math.sqrt(H)))
    params = {
        "wq": init(k_wq, (H, H)), "bq": init(k_bq, (H,)),
        "wk": init(k_wk, (H, H)), "bk": init(k_bk, (H,)),
        "wv": init(k_wv, (H, H)), "bv": init(k_bv, (H,)),
    }

    # Additive HF padding mask (0 = attend, -1e9 = masked), shape [B, 1, 1, S].
    mask_bits = (jax.random.uniform(k_m, (B, 1, 1, S)) > 0.1).astype(jnp.float32)
    attention_mask = (1.0 - mask_bits) * -1e9

    out = bert_generation_self_attention(hidden_states, params, attention_mask,
                                         num_heads=NUM_HEADS)
    out = jax.block_until_ready(out)

    ref = _reference(hidden_states, params, attention_mask, NUM_HEADS)
    assert out.shape == (B, S, H)
    # bf16 matmuls with f32 accumulation -> relaxed tolerance vs f32 reference.
    assert jnp.allclose(out, ref, atol=5e-2, rtol=5e-2), "mismatch vs reference"

    print("KERNEL_OK")
</pallas_src>

<mosaic_0001>
module attributes {stable_mosaic.version = 11 : i64} {
  func.func @_qkv_proj_kernel(%arg0: i32, %arg1: i32, %arg2: memref<1x8x32xf32, #tpu.memory_space<vmem>>, %arg3: memref<32x96xbf16, #tpu.memory_space<vmem>>, %arg4: memref<1x96xf32, #tpu.memory_space<vmem>>, %arg5: memref<1x8x32xbf16, #tpu.memory_space<vmem>>, %arg6: memref<1x8x32xbf16, #tpu.memory_space<vmem>>, %arg7: memref<1x8x32xbf16, #tpu.memory_space<vmem>>) attributes {dimension_semantics = [#tpu.dimension_semantics<parallel>, #tpu.dimension_semantics<parallel>], iteration_bounds = array<i64: 2, 1>, scalar_prefetch = 0 : i64, scratch_operands = 0 : i64, tpu.core_type = #tpu.core_type<tc>, window_params = [{transform_indices = @transform_0, window_bounds = array<i64: 1, 8, 32>}, {pipeline_mode = #tpu.pipeline_mode<synchronous>, transform_indices = @transform_1, window_bounds = array<i64: 32, 96>}, {pipeline_mode = #tpu.pipeline_mode<synchronous>, transform_indices = @transform_2, window_bounds = array<i64: 1, 96>}, {transform_indices = @transform_3, window_bounds = array<i64: 1, 8, 32>}, {transform_indices = @transform_4, window_bounds = array<i64: 1, 8, 32>}, {transform_indices = @transform_5, window_bounds = array<i64: 1, 8, 32>}]} {
    %c0 = arith.constant 0 : index
    %c0_0 = arith.constant 0 : index
    %c0_1 = arith.constant 0 : index
    %0 = vector.load %arg2[%c0, %c0_0, %c0_1] : memref<1x8x32xf32, #tpu.memory_space<vmem>>, vector<1x8x32xf32>
    %1 = vector.shape_cast %0 : vector<1x8x32xf32> to vector<8x32xf32>
    %2 = arith.truncf %1 : vector<8x32xf32> to vector<8x32xbf16>
    %c0_2 = arith.constant 0 : index
    %c0_3 = arith.constant 0 : index
    %3 = vector.load %arg3[%c0_2, %c0_3] : memref<32x96xbf16, #tpu.memory_space<vmem>>, vector<32x96xbf16>
    %cst = arith.constant dense<0.000000e+00> : vector<8x96xf32>
    %4 = tpu.matmul %2, %3, %cst {dimension_numbers = #tpu.dot_dimension_numbers<[1], [0], [0], [1], [0, 0, 1, 1], [], []>} : vector<8x32xbf16>, vector<32x96xbf16>, vector<8x96xf32> -> vector<8x96xf32>
    %c0_4 = arith.constant 0 : index
    %c0_5 = arith.constant 0 : index
    %5 = vector.load %arg4[%c0_4, %c0_5] : memref<1x96xf32, #tpu.memory_space<vmem>>, vector<1x96xf32>
    %6 = vector.broadcast %5 : vector<1x96xf32> to vector<8x96xf32>
    %7 = arith.addf %4, %6 : vector<8x96xf32>
    %8 = vector.extract_strided_slice %7 {offsets = [0, 0], sizes = [8, 32], strides = [1, 1]} : vector<8x96xf32> to vector<8x32xf32>
    %cst_6 = arith.constant 0.353553385 : f32
    %9 = vector.broadcast %cst_6 : f32 to vector<8x32xf32>
    %10 = arith.mulf %8, %9 : vector<8x32xf32>
    %11 = arith.truncf %10 : vector<8x32xf32> to vector<8x32xbf16>
    %c0_7 = arith.constant 0 : index
    %c0_8 = arith.constant 0 : index
    %c0_9 = arith.constant 0 : index
    %12 = vector.load %arg5[%c0_7, %c0_8, %c0_9] : memref<1x8x32xbf16, #tpu.memory_space<vmem>>, vector<1x8x32xbf16>
    %13 = vector.shape_cast %12 : vector<1x8x32xbf16> to vector<8x32xbf16>
    %14 = vector.shape_cast %11 : vector<8x32xbf16> to vector<1x8x32xbf16>
    tpu.vector_store %arg5[%c0_7, %c0_8, %c0_9], %14 {strides = array<i32>} : memref<1x8x32xbf16, #tpu.memory_space<vmem>>, vector<1x8x32xbf16>,
    %15 = vector.extract_strided_slice %7 {offsets = [0, 32], sizes = [8, 32], strides = [1, 1]} : vector<8x96xf32> to vector<8x32xf32>
    %16 = arith.truncf %15 : vector<8x32xf32> to vector<8x32xbf16>
    %c0_10 = arith.constant 0 : index
    %c0_11 = arith.constant 0 : index
    %c0_12 = arith.constant 0 : index
    %17 = vector.load %arg6[%c0_10, %c0_11, %c0_12] : memref<1x8x32xbf16, #tpu.memory_space<vmem>>, vector<1x8x32xbf16>
    %18 = vector.shape_cast %17 : vector<1x8x32xbf16> to vector<8x32xbf16>
    %19 = vector.shape_cast %16 : vector<8x32xbf16> to vector<1x8x32xbf16>
    tpu.vector_store %arg6[%c0_10, %c0_11, %c0_12], %19 {strides = array<i32>} : memref<1x8x32xbf16, #tpu.memory_space<vmem>>, vector<1x8x32xbf16>,
    %20 = vector.extract_strided_slice %7 {offsets = [0, 64], sizes = [8, 32], strides = [1, 1]} : vector<8x96xf32> to vector<8x32xf32>
    %21 = arith.truncf %20 : vector<8x32xf32> to vector<8x32xbf16>
    %c0_13 = arith.constant 0 : index
    %c0_14 = arith.constant 0 : index
    %c0_15 = arith.constant 0 : index
    %22 = vector.load %arg7[%c0_13, %c0_14, %c0_15] : memref<1x8x32xbf16, #tpu.memory_space<vmem>>, vector<1x8x32xbf16>
    %23 = vector.shape_cast %22 : vector<1x8x32xbf16> to vector<8x32xbf16>
    %24 = vector.shape_cast %21 : vector<8x32xbf16> to vector<1x8x32xbf16>
    tpu.vector_store %arg7[%c0_13, %c0_14, %c0_15], %24 {strides = array<i32>} : memref<1x8x32xbf16, #tpu.memory_space<vmem>>, vector<1x8x32xbf16>,
    return
  }
  func.func @transform_0(%arg0: i32, %arg1: i32) -> (i32, i32, i32) {
    %c0_i32 = arith.constant 0 : i32
    %c0_i32_0 = arith.constant 0 : i32
    return %arg0, %arg1, %c0_i32 : i32, i32, i32
  }
  func.func @transform_1(%arg0: i32, %arg1: i32) -> (i32, i32) {
    %c0_i32 = arith.constant 0 : i32
    %c0_i32_0 = arith.constant 0 : i32
    %c0_i32_1 = arith.constant 0 : i32
    return %c0_i32, %c0_i32_0 : i32, i32
  }
  func.func @transform_2(%arg0: i32, %arg1: i32) -> (i32, i32) {
    %c0_i32 = arith.constant 0 : i32
    %c0_i32_0 = arith.constant 0 : i32
    %c0_i32_1 = arith.constant 0 : i32
    return %c0_i32, %c0_i32_0 : i32, i32
  }
  func.func @transform_3(%arg0: i32, %arg1: i32) -> (i32, i32, i32) {
    %c0_i32 = arith.constant 0 : i32
    %c0_i32_0 = arith.constant 0 : i32
    return %arg0, %arg1, %c0_i32 : i32, i32, i32
  }
  func.func @transform_4(%arg0: i32, %arg1: i32) -> (i32, i32, i32) {
    %c0_i32 = arith.constant 0 : i32
    %c0_i32_0 = arith.constant 0 : i32
    return %arg0, %arg1, %c0_i32 : i32, i32, i32
  }
  func.func @transform_5(%arg0: i32, %arg1: i32) -> (i32, i32, i32) {
    %c0_i32 = arith.constant 0 : i32
    %c0_i32_0 = arith.constant 0 : i32
    return %arg0, %arg1, %c0_i32 : i32, i32, i32
  }
}

</mosaic_0001>

<bundles_post_ra>
// kernel: tpu_custom_call.1
= control target key start
LH: loop header
LB: loop body
LE: loop exit
PB: predicated region body
PF: predicated region fallthrough
CT: control target
= control target key end

     0   :  { %s1122_s0 = inlined_call_operand.hbm [shape: f32[2,8,32], index: 0, kind: input, shape index: {}]   ;;  %s1123_s1 = inlined_call_operand.hbm [shape: bf16[32,96], index: 1, kind: input, shape index: {}]   ;;  %s1124_s2 = inlined_call_operand.vmem [shape: f32[1,96], index: 2, kind: input, shape index: {}]   ;;  %s1125_s3 = inlined_call_operand.hbm [shape: bf16[2,8,32], index: 3, kind: output, shape index: {0}]   ;;  %s1126_s4 = inlined_call_operand.hbm [shape: bf16[2,8,32], index: 4, kind: output, shape index: {1}]   ;;  %s1127_s5 = inlined_call_operand.hbm [shape: bf16[2,8,32], index: 5, kind: output, shape index: {2}]  }
   0x1   :  { %1129 = sst [smem:[#allocation15_spill]] %s1122_s0 }
   0x2   :  { %11 = vsyncpa [#allocation3], 0 }
   0x3   :  { %13 = vsyncpa [#allocation3 + $0x1], 0 }
   0x4   :  { %14 = vsyncpa [#allocation6], 0 }
   0x5   :  { %15 = vsyncpa [#allocation4], 0 }
   0x6   :  { %17 = vsyncpa [#allocation4 + $0x1], 0 }
   0x7   :  { %18 = vsyncpa [#allocation9], 0 }
   0x8   :  { %20 = vsyncpa [#allocation9 + $0x1], 0  ;;  %s927_s18 = smov 0   ;;  %s929_s19 = smov 0  }
   0x9   :  { %s931_s20 = smov 0   ;;  %s933_s21 = smov 0  }
   0xa   :  { %s935_s22 = smov 0   ;;  %s937_s23 = smov 0  }
   0xb LB: > { %s958_s24 = sadd.s32 4294967295, %s890_s23   ;;  %p566_p0 = scmp.ge.s32.totalorder %s890_s23, 1  ;;  %s890_s23 = sphi %s937_s23, %s26_s23   ;;  %s886_s22 = sphi %s935_s22, %s1141_s22   ;;  %s882_s21 = sphi %s933_s21, %s1140_s21   ;;  %s878_s20 = sphi %s931_s20, %s1139_s20   ;;  %s874_s19 = sphi %s929_s19, %s1138_s19   ;;  %s870_s18 = sphi %s927_s18, %s1137_s18  }
   0xc   : > { %p61_p1 = scmp.eq.s32.totalorder %s958_s24, 0  ;;  %p197_p2 = scmp.lt.s32.totalorder %s890_s23, 3 }
   0xd   : > { %s208_s27 = sshll.u32 %s1123_s1, 4  ;;  %s892_s29 = smov [#allocation5]   ;;  %s209_s27 = int_to_ptr.hbm [resolvable:$true] %s208_s27 }
   0xe   : > { %p966_p3 = pnand %p566_p0, %p197_p2  ;;  %s210_s30 = sshll.u32 %s892_s29, 4  ;;  %s211_s30 = int_to_ptr.vmem [resolvable:$true] %s210_s30 }
   0xf   : > { %p568_p6 = scmp.ge.s32.totalorder %s890_s23, 2  ;;  %s893_s6 = smov 64  }
  0x10   : > { %p608_p4 = pneg %p966_p3  ;;  %s894_s7 = smov 4  }
  0x11   : > { %s1128_s8 = sadd.s32 4294967294, %s890_s23   ;;  %s38_s9 = sadd.s32 1, %s886_s22 }
  0x12   : > { %p609_p5 = pnand %p608_p4, %p61_p1  ;;  %s47_s10 = sadd.s32 1, %s878_s20 }
  0x13   : > { %p40_p7 = scmp.ge.s32.totalorder %s38_s9, 2  ;;  %p54_p8 = scmp.ne.s32.totalorder %s878_s20, %s874_s19 }
  0x14   : > { %611 = dma.hbm_to_vmem [thread:$0]  (!%p609_p5), %s209_s27, 256, %s211_s30, [#allocation6], %s893_s6, %s893_s6, %s894_s7  }
  0x15   : > { %p55_p9 = scmp.eq.s32.totalorder %s890_s23, 0  ;;  %p60_p10 = scmp.ne.s32.totalorder %s874_s19, %s870_s18 }
  0x16   : > { %s1143_s9 = smov (%p40_p7, %s38_s9), 0  ;;  %p128_p13 = scmp.eq.s32.totalorder %s958_s24, 1 }
  0x17   : > { %p985_p11 = por %p55_p9, %p54_p8  ;;  %p991_p12 = por %p61_p1, %p60_p10 }
  0x18   : > { %s42_s13 = ssub.s32 %s886_s22, %s1143_s9  ;;  %p134_p2 = scmp.eq.s32.totalorder %s1128_s8, 1 }
  0x19   : > { %p45_p0 = scmp.eq.s32.totalorder %s42_s13, 0  ;;  %p1000_p4 = por %p128_p13, %p54_p8 }
  0x1a   : > { %p627_p5 = scmp.lt.s32.totalorder %s890_s23, 2  ;;  %p1008_p7 = por %p134_p2, %p60_p10 }
  0x1b   : > { %s1006_s15 = scalar_select %p45_p0, %s878_s20, %s47_s10  }
  0x1c   : > { %s227_s17 = sand.u32 1, %s878_s20   ;;  %s570_s26 = sshll.u32 %s886_s22, 3 }
  0x1d   : > { %s569_s25 = sshll.u32 %s227_s17, 3  ;;  %s1135_s0 = sld [smem:[#allocation15_spill]] }
  0x1e   : > { %s231_s6 = scalar_lea.vmem [#allocation2], %s569_s25  ;;  %p613_p8 = pnand %p627_p5, %p985_p11 }
  0x1f   : > { %s240_s7 = sshll.u32 %s231_s6, 4  ;;  %s228_s10 = scalar_lea.sflag [#allocation3], %s227_s17  ;;  %s241_s7 = int_to_ptr.vmem [resolvable:$true] %s240_s7 }
  0x20   : > { %s1022_s8 = sand.u32 (!%p966_p3), 1, %s874_s19  }
  0x21   : > { %249 = sbr.rel (%p966_p3) target bundleno = 310 (0x136), region = 32  ;;  %s572_s27 = sshll.u32 (!%p966_p3), %s1022_s8, 3 }
  0x22   : > { %s255_s25 = scalar_lea.vmem (!%p966_p3), [#allocation2], %s572_s27 }
  0x23   : > { %s236_s30 = scalar_lea.hbm %s1135_s0, %s570_s26  ;;  %s252_s26 = scalar_lea.sflag (!%p966_p3), [#allocation3], %s1022_s8 }
  0x24   : > { %s238_s13 = sshll.u32 %s236_s30, 4  ;;  %s239_s13 = int_to_ptr.hbm [resolvable:$true] %s238_s13 }
  0x25   : > { %615 = dma.hbm_to_vmem [thread:$0]  (!%p613_p8), %s239_s13, 128, %s241_s7, %s228_s10  }
  0x26   : > { %853 = dma.done.wait (%p991_p12), %s252_s26, 128  }
  0x27   : > { %855 = vsyncadd (%p991_p12), %s252_s26, 4294967168 }
  0x28   : > { %857 = dma.done.wait (%p61_p1), [#allocation6], 256  }
  0x29   : > { %859 = vsyncadd (%p61_p1), [#allocation6], 4294967040  ;;  %v595_v0 = vld [vmem:[#allocation5 + $0x8] sm:$0xff]  ;;  %v594_v1 = vld [vmem:[#allocation5] sm:$0xff]  ;;  %vm321_vm0 = vcmask 261120   ;;  %s1038_s12 = sshll.u32 %s1022_s8, 2 }
  0x2a   : > { %331 = vmatpush.bf16.msra.mxu0 %v595_v0  ;;  %v299_v2 = vld [vmem:[%s255_s25] sm:$0xff]  ;;  %s1041_s17 = sshll.u32 %s882_s21, 2  ;;  %s283_s7 = scalar_lea.vmem [#allocation7], %s1038_s12  ;;  %vm340_vm1 = vcmask 257024  }
  0x2b   : > { %v300_v3 = vpack.c.bf16 %v299_v2, %v299_v2  ;;  %v683_v4 = vld [vmem:[%s1124_s2] ss:$0 sm:$0xff]  ;;  %s374_s6 = scalar_lea.hbm %s1125_s3, %s1041_s17  ;;  %s376_s13 = sshll.u32 %s283_s7, 4  ;;  %s377_s13 = int_to_ptr.vmem [resolvable:$true] %s376_s13 }
  0x2c   : > { %s378_s10 = sshll.u32 %s374_s6, 4  ;;  %s895_s27 = smov 96   ;;  %s379_s10 = int_to_ptr.hbm [resolvable:$true] %s378_s10 }
  0x2d   : > { %s353_s21 = scalar_lea.sflag [#allocation4], %s1022_s8  ;;  %s758_s26 = sshra.s32 %s379_s10, 4  ;;  %s759_s26 = int_to_ptr.hbm [resolvable:$true] %s758_s26 }
  0x2e   : > { %332 = vmatpush.bf16.msra.mxu0 %v594_v1  ;;  %s760_s25 = scalar_lea.hbm %s759_s26, 4  ;;  %s764_s29 = scalar_lea.hbm %s1125_s3, 8 }
  0x2f   : > { %p761_p1 = scmp.ne.s32.totalorder %s759_s26, %s760_s25  ;;  %p765_p10 = scmp.lt.s32.totalorder %s759_s26, %s1125_s3 }
  0x30   : > { %p766_p11 = scmp.lt.s32.totalorder %s764_s29, %s760_s25 }
  0x31   : > { %585 = vmatmul.msk.bf16.vlgmr.msra.gmra.mxu0 %vm321_vm0, %v300_v3  ;;  %p762_p3 = pnand %p761_p1, %p1000_p4 }
  0x32   : > { %p767_p12 = por %p766_p11, %p765_p10 }
  0x33   : > { %p763_p9 = pneg %p762_p3 }
  0x35   : > { %p768_p13 = pnand %p767_p12, %p763_p9 }
  0xae   : > { %v334_v5 = vpop.f32.mrf.mxu0 }
  0xaf   : > { %v335_v6 = vadd.f32 %v683_v4, %v334_v5 }
  0xb1   : > { %v338_v7 = vmul.f32 0.35355338, %v335_v6  ;;  %v342_v8 = vpack.c.bf16 %v335_v6, %v335_v6 }
  0xb3   : > { %v339_v9 = vpack.c.bf16 %v338_v7, %v338_v7  ;;  %344 = vrot.lane.b32.xlu0 %v342_v8, %s895_s27 }
  0xb5   : > { %341 = vst.msk [vmem:[%s283_s7] sm:$0xf] %vm340_vm1, %v339_v9 }
  0xb6   : > { %v336_v10 = vpop.f32.mrf.mxu0 }
  0xb7   : > { %771 = shalt.err (!%p768_p13)
}
  0xb8   : > { %602 = dma.vmem_to_hbm [thread:$0]  (%p1000_p4), %s377_s13, 64, %s379_s10, %s353_s21  }
  0xb9   : > { %s896_s8 = smov 64   ;;  %s389_s28 = scalar_lea.hbm %s1126_s4, %s1041_s17 }
  0xba   : > { %s357_s11 = sand.u32 1, %s958_s24   ;;  %s290_s26 = scalar_lea.vmem [#allocation8], %s1038_s12 }
  0xbb   : > { %348 = vrot.lane.b32.xlu0 %v342_v8, %s896_s8  ;;  %s391_s25 = sshll.u32 %s290_s26, 4  ;;  %s393_s29 = sshll.u32 %s389_s28, 4  ;;  %s392_s25 = int_to_ptr.vmem [resolvable:$true] %s391_s25  ;;  %s394_s29 = int_to_ptr.hbm [resolvable:$true] %s393_s29 }
  0xbc   : > { %s404_s13 = scalar_lea.hbm %s1127_s5, %s1041_s17  ;;  %s1071_s10 = scalar_lea.sflag [#allocation9], %s357_s11 }
  0xbd   : > { %s786_s21 = sshra.s32 %s394_s29, 4  ;;  %s792_s27 = scalar_lea.hbm %s1126_s4, 8  ;;  %s787_s21 = int_to_ptr.hbm [resolvable:$true] %s786_s21 }
  0xbe   : > { %s788_s8 = scalar_lea.hbm %s787_s21, 4  ;;  %p793_p8 = scmp.lt.s32.totalorder %s787_s21, %s1126_s4 }
  0xbf   : > { %p789_p0 = scmp.ne.s32.totalorder %s787_s21, %s788_s8  ;;  %p794_p1 = scmp.lt.s32.totalorder %s792_s27, %s788_s8 }
  0xc1   : > { %p790_p2 = pnand %p789_p0, %p1000_p4  ;;  %p795_p3 = por %p794_p1, %p793_p8 }
  0xc3   : > { %p791_p5 = pneg %p790_p2 }
  0xc5   : > { %p796_p9 = pnand %p795_p3, %p791_p5 }
 0x125   : > { %v345_v11 = vpop.permute.xlu0 %344 }
 0x126   : > { %347 = vst.msk [vmem:[%s290_s26] sm:$0xf] %vm340_vm1, %v345_v11 }
 0x127   : > { %799 = shalt.err (!%p796_p9)
}
 0x128   : > { %603 = dma.vmem_to_hbm [thread:$0]  (%p1000_p4), %s392_s25, 64, %s394_s29, %s1071_s10  }
 0x129   : > { %s297_s17 = scalar_lea.vmem [#allocation10], %s1038_s12  ;;  %s408_s26 = sshll.u32 %s404_s13, 4  ;;  %s409_s26 = int_to_ptr.hbm [resolvable:$true] %s408_s26 }
 0x12a   : > { %s406_s11 = sshll.u32 %s297_s17, 4  ;;  %s814_s0 = sshra.s32 %s409_s26, 4  ;;  %s407_s11 = int_to_ptr.vmem [resolvable:$true] %s406_s11  ;;  %s815_s0 = int_to_ptr.hbm [resolvable:$true] %s814_s0 }
 0x12b   : > { %s816_s30 = scalar_lea.hbm %s815_s0, 4  ;;  %s820_s8 = scalar_lea.hbm %s1127_s5, 8 }
 0x12c   : > { %p817_p10 = scmp.ne.s32.totalorder %s815_s0, %s816_s30  ;;  %p821_p13 = scmp.lt.s32.totalorder %s815_s0, %s1127_s5 }
 0x12d   : > { %v349_v12 = vpop.permute.xlu0 %348  ;;  %p822_p0 = scmp.lt.s32.totalorder %s820_s8, %s816_s30 }
 0x12e   : > { %351 = vst.msk [vmem:[%s297_s17] sm:$0xf] %vm340_vm1, %v349_v12  ;;  %p818_p11 = pnand %p817_p10, %p1000_p4 }
 0x12f   : > { %p823_p2 = por %p822_p0, %p821_p13 }
 0x130   : > { %p819_p12 = pneg %p818_p11 }
 0x132   : > { %p824_p5 = pnand %p823_p2, %p819_p12 }
 0x134   : > { %827 = shalt.err (!%p824_p5)
}
 0x135   : > { %604 = dma.vmem_to_hbm [thread:$0]  (%p1000_p4), %s407_s11, 64, %s409_s26, %s1071_s10  }
 0x136 PF: > { %s420_s29 = sand.u32 1, %s870_s18   ;;  %p617_p8 = pnand %p568_p6, %p1008_p7 }
 0x137   : > { %s421_s13 = scalar_lea.sflag [#allocation4], %s420_s29 }
 0x138   : > { %p618_p1 = pneg %p617_p8 }
 0x13a   : > { %861 = dma.done.wait (%p618_p1), %s421_s13, 64  }
 0x13b   : > { %863 = vsyncadd (%p618_p1), %s421_s13, 4294967232  ;;  %s1136_s24 = sadd.s32 4294967294, %s890_s23  }
 0x13c   : > { %s430_s7 = sand.u32 1, %s1136_s24  }
 0x13d   : > { %s431_s27 = scalar_lea.sflag [#allocation9], %s430_s7 }
 0x13e   : > { %865 = dma.done.wait (%p618_p1), %s431_s27, 128  }
 0x13f   : > { %867 = vsyncadd (%p618_p1), %s431_s27, 4294967168  ;;  %s26_s23 = sadd.s32 1, %s890_s23   ;;  %s1137_s18 = smov %s874_s19 }
 0x140   : > { %p23_p4 = scmp.ge.s32.totalorder %s26_s23, 4   ;;  %s1138_s19 = smov %s878_s20 }
 0x141   : > { %s1139_s20 = smov %s1006_s15  ;;  %s1140_s21 = smov %s886_s22 }
 0x142   : > { %s1141_s22 = smov %s1143_s9  ;;  %25 = sbr.rel (!%p23_p4) target bundleno = 11 (0xb), region = 113 }
 0x147   :  { %447 = vsyncpa [#allocation3], 1 }
 0x148   :  { %449 = vsyncpa [#allocation3 + $0x1], 1 }
 0x149   :  { %450 = vsyncpa [#allocation6], 1 }
 0x14a   :  { %451 = vsyncpa [#allocation4], 1 }
 0x14b   :  { %453 = vsyncpa [#allocation4 + $0x1], 1 }
 0x14c   :  { %454 = vsyncpa [#allocation9], 1 }
 0x14d   :  { %456 = vsyncpa [#allocation9 + $0x1], 1 }

</bundles_post_ra>
